<compile_context>
chip_gen: v7x
topology: tpu7x:2x2x1
jax: 0.10.0
libtpu: 0.0.40
codegen_flags: <defaults>
</compile_context>

<pallas_src>
import functools
import math

import jax
import jax.numpy as jnp
from jax.experimental import pallas as pl
from jax.experimental.pallas import tpu as pltpu


def _gelu_exact(x):
    # PyTorch nn.GELU default is the exact erf formulation (jax.nn.gelu
    # defaults to the tanh approximation, which would mismatch).
    return 0.5 * x * (1.0 + jax.lax.erf(x / jnp.sqrt(2.0).astype(x.dtype)))


_ACTIVATIONS = {
    "ReLU": lambda x: jnp.maximum(x, 0.0),
    "Tanh": jnp.tanh,
    "Sigmoid": jax.nn.sigmoid,
    "GELU": _gelu_exact,
}


def _make_mlp_kernel(num_hidden, activation, tm):
    """Fused MLP kernel: `num_hidden` (Linear -> act) layers + Linear(D,1) + Tanh.

    Kernel refs: (x, w0, b0, ..., w_{h-1}, b_{h-1}, w_last, b_last, out)
      w_i    : bf16 [in, out]  (pre-transposed in the wrapper)
      b_i    : f32  [1, out]
      w_last : f32  [1, D_last]
      b_last : f32  [1, 1]
      out    : f32  [1, TM]    (lane-dense slab; reshaped to [batch,1] outside)
    """
    act = _ACTIVATIONS[activation]

    def kernel(x_ref, *refs):
        out_ref = refs[-1]
        h = x_ref[...].astype(jnp.float32)                      # (TM, D_in)
        for i in range(num_hidden):
            w = refs[2 * i][...]                                 # bf16 [in, out]
            b = refs[2 * i + 1][...]                             # f32  [1, out]
            # bf16 MXU inputs, f32 accumulation; bias/activation stay in f32.
            h = jnp.dot(h.astype(jnp.bfloat16), w,
                        preferred_element_type=jnp.float32) + b
            h = act(h)
        w_row = refs[2 * num_hidden][...]                        # f32 [1, D_last]
        b_sc = refs[2 * num_hidden + 1][...]                     # f32 [1, 1]
        # Final Linear(D,1) + Tanh as VPU multiply + row reduce (no N=1 matmul).
        s = jnp.sum(h * w_row, axis=-1, keepdims=True) + b_sc    # (TM, 1)
        res = jnp.tanh(s)
        # Lane-dense store: one unmasked (1, TM) slab instead of a last-dim-1 block.
        out_ref[...] = res.reshape(1, tm).astype(out_ref.dtype)

    return kernel


def linear_net_forward(x, params, activation="ReLU", tm=128):
    """Pallas forward for LinearNet (batch_norm=False path).

    x:      [batch, layers[0]]  float32
    params: list of (W [out,in], b [out]) -- hidden linears followed by the
            final Linear(in_p, 1).
    tm:     batch tile (multiple of 128). Re-derive per generation if raising
            it (v7x has 64 MiB VMEM vs 128 MiB on v5e/v6e).
    """
    # TODO(synk): batch_norm=True (nn.BatchNorm1d between Linear and act) is
    # not implemented; this kernel corresponds to batch_norm=False.
    num_hidden = len(params) - 1
    batch, d_in = x.shape
    padded = ((batch + tm - 1) // tm) * tm
    x = x.astype(jnp.float32)
    if padded != batch:
        x = jnp.pad(x, ((0, padded - batch), (0, 0)))

    flat = []
    in_specs = [pl.BlockSpec((tm, d_in), lambda i: (i, 0))]      # x: batch-tiled

    # Hidden layers: pre-transpose to [in, out] (one-time host cost) + bf16 cast.
    for w, b in params[:-1]:
        wt = jnp.asarray(w, jnp.float32).T.astype(jnp.bfloat16)  # [in, out] bf16
        bb = jnp.asarray(b, jnp.float32).reshape(1, -1)          # [1, out]  f32
        flat += [wt, bb]
        # Constant index maps -> weights/biases DMA'd once, stay VMEM-resident.
        in_specs += [pl.BlockSpec(wt.shape, lambda i: (0, 0)),
                     pl.BlockSpec(bb.shape, lambda i: (0, 0))]

    # Final Linear(D_last, 1): keep as an f32 row vector for the VPU reduce.
    w_last, b_last = params[-1]
    w_row = jnp.asarray(w_last, jnp.float32).reshape(1, -1)      # [1, D_last]
    b_sc = jnp.asarray(b_last, jnp.float32).reshape(1, 1)        # [1, 1]
    flat += [w_row, b_sc]
    in_specs += [pl.BlockSpec(w_row.shape, lambda i: (0, 0)),
                 pl.BlockSpec(b_sc.shape, lambda i: (0, 0))]

    kernel = _make_mlp_kernel(num_hidden, activation, tm)

    out = pl.pallas_call(
        kernel,
        out_shape=jax.ShapeDtypeStruct((1, padded), jnp.float32),
        grid=(padded // tm,),
        in_specs=in_specs,
        out_specs=pl.BlockSpec((1, tm), lambda i: (0, i)),       # lane-dense slab
        compiler_params=pltpu.CompilerParams(
            dimension_semantics=("parallel",),                   # megacore on v7x
        ),
    )(x, *flat)

    # Free layout plumbing: (1, padded) slab -> (batch, 1) column.
    return out.reshape(padded, 1)[:batch]


def init_linear_net_params(key, layers):
    """Deterministic parameter init matching LinearNet.__init__ shapes.

    LinearNet builds Linear(layers[0], layers[0]), ..., Linear(layers[-2],
    layers[-1]), then a final Linear(layers[-1], 1).
    """
    params = []
    in_p = layers[0]
    dims = list(layers) + [1]
    for out_p in dims:
        key, kw, kb = jax.random.split(key, 3)
        bound = 1.0 / math.sqrt(in_p)
        w = jax.random.uniform(kw, (out_p, in_p), jnp.float32, -bound, bound)
        b = jax.random.uniform(kb, (out_p,), jnp.float32, -bound, bound)
        params.append((w, b))
        in_p = out_p
    return params


def _reference_forward(x, params, activation="ReLU"):
    """Plain-JAX reference mirroring the kernel's bf16-matmul / f32-accumulate math."""
    act = _ACTIVATIONS[activation]
    h = x.astype(jnp.float32)
    for w, b in params[:-1]:
        wt = jnp.asarray(w, jnp.float32).T.astype(jnp.bfloat16)
        h = jnp.dot(h.astype(jnp.bfloat16), wt,
                    preferred_element_type=jnp.float32)
        h = act(h + jnp.asarray(b, jnp.float32).reshape(1, -1))
    w_last, b_last = params[-1]
    s = jnp.sum(h * jnp.asarray(w_last, jnp.float32).reshape(1, -1),
                axis=-1, keepdims=True) + jnp.asarray(b_last, jnp.float32).reshape(1, 1)
    return jnp.tanh(s)


if __name__ == "__main__":
    # Small config consistent with LinearNet(layers=[32, 32], activation="ReLU")
    layers = [32, 32]
    activation = "ReLU"
    batch = 8

    key = jax.random.PRNGKey(0)
    key, kx = jax.random.split(key)
    x = jax.random.normal(kx, (batch, layers[0]), jnp.float32)
    params = init_linear_net_params(key, layers)

    fwd = jax.jit(functools.partial(linear_net_forward, activation=activation))
    out = fwd(x, params)
    jax.block_until_ready(out)

    ref = _reference_forward(x, params, activation)
    assert out.shape == (batch, 1), out.shape
    assert jnp.allclose(out, ref, atol=1e-3, rtol=1e-3), "mismatch vs reference"

    print("KERNEL_OK")
</pallas_src>

<mosaic_0001>
module attributes {stable_mosaic.version = 11 : i64} {
  func.func @kernel(%arg0: i32, %arg1: memref<128x32xf32, #tpu.memory_space<vmem>>, %arg2: memref<32x32xbf16, #tpu.memory_space<vmem>>, %arg3: memref<1x32xf32, #tpu.memory_space<vmem>>, %arg4: memref<32x32xbf16, #tpu.memory_space<vmem>>, %arg5: memref<1x32xf32, #tpu.memory_space<vmem>>, %arg6: memref<1x32xf32, #tpu.memory_space<vmem>>, %arg7: memref<1x1xf32, #tpu.memory_space<vmem>>, %arg8: memref<1x128xf32, #tpu.memory_space<vmem>>) attributes {dimension_semantics = [#tpu.dimension_semantics<parallel>], iteration_bounds = array<i64: 1>, scalar_prefetch = 0 : i64, scratch_operands = 0 : i64, tpu.core_type = #tpu.core_type<tc>, window_params = [{transform_indices = @transform_0, window_bounds = array<i64: 128, 32>}, {pipeline_mode = #tpu.pipeline_mode<synchronous>, transform_indices = @transform_1, window_bounds = array<i64: 32, 32>}, {pipeline_mode = #tpu.pipeline_mode<synchronous>, transform_indices = @transform_2, window_bounds = array<i64: 1, 32>}, {pipeline_mode = #tpu.pipeline_mode<synchronous>, transform_indices = @transform_3, window_bounds = array<i64: 32, 32>}, {pipeline_mode = #tpu.pipeline_mode<synchronous>, transform_indices = @transform_4, window_bounds = array<i64: 1, 32>}, {pipeline_mode = #tpu.pipeline_mode<synchronous>, transform_indices = @transform_5, window_bounds = array<i64: 1, 32>}, {pipeline_mode = #tpu.pipeline_mode<synchronous>, transform_indices = @transform_6, window_bounds = array<i64: 1, 1>}, {transform_indices = @transform_7, window_bounds = array<i64: 1, 128>}]} {
    %c0 = arith.constant 0 : index
    %c0_0 = arith.constant 0 : index
    %0 = vector.load %arg1[%c0, %c0_0] : memref<128x32xf32, #tpu.memory_space<vmem>>, vector<128x32xf32>
    %c0_1 = arith.constant 0 : index
    %c0_2 = arith.constant 0 : index
    %1 = vector.load %arg2[%c0_1, %c0_2] : memref<32x32xbf16, #tpu.memory_space<vmem>>, vector<32x32xbf16>
    %c0_3 = arith.constant 0 : index
    %c0_4 = arith.constant 0 : index
    %2 = vector.load %arg3[%c0_3, %c0_4] : memref<1x32xf32, #tpu.memory_space<vmem>>, vector<1x32xf32>
    %3 = arith.truncf %0 : vector<128x32xf32> to vector<128x32xbf16>
    %cst = arith.constant dense<0.000000e+00> : vector<128x32xf32>
    %4 = tpu.matmul %3, %1, %cst {dimension_numbers = #tpu.dot_dimension_numbers<[1], [0], [0], [1], [0, 0, 1, 1], [], []>} : vector<128x32xbf16>, vector<32x32xbf16>, vector<128x32xf32> -> vector<128x32xf32>
    %5 = vector.broadcast %2 : vector<1x32xf32> to vector<128x32xf32>
    %6 = arith.addf %4, %5 : vector<128x32xf32>
    %cst_5 = arith.constant 0.000000e+00 : f32
    %7 = vector.broadcast %cst_5 : f32 to vector<128x32xf32>
    %8 = arith.maximumf %6, %7 : vector<128x32xf32>
    %c0_6 = arith.constant 0 : index
    %c0_7 = arith.constant 0 : index
    %9 = vector.load %arg4[%c0_6, %c0_7] : memref<32x32xbf16, #tpu.memory_space<vmem>>, vector<32x32xbf16>
    %c0_8 = arith.constant 0 : index
    %c0_9 = arith.constant 0 : index
    %10 = vector.load %arg5[%c0_8, %c0_9] : memref<1x32xf32, #tpu.memory_space<vmem>>, vector<1x32xf32>
    %11 = arith.truncf %8 : vector<128x32xf32> to vector<128x32xbf16>
    %cst_10 = arith.constant dense<0.000000e+00> : vector<128x32xf32>
    %12 = tpu.matmul %11, %9, %cst_10 {dimension_numbers = #tpu.dot_dimension_numbers<[1], [0], [0], [1], [0, 0, 1, 1], [], []>} : vector<128x32xbf16>, vector<32x32xbf16>, vector<128x32xf32> -> vector<128x32xf32>
    %13 = vector.broadcast %10 : vector<1x32xf32> to vector<128x32xf32>
    %14 = arith.addf %12, %13 : vector<128x32xf32>
    %cst_11 = arith.constant 0.000000e+00 : f32
    %15 = vector.broadcast %cst_11 : f32 to vector<128x32xf32>
    %16 = arith.maximumf %14, %15 : vector<128x32xf32>
    %c0_12 = arith.constant 0 : index
    %c0_13 = arith.constant 0 : index
    %17 = vector.load %arg6[%c0_12, %c0_13] : memref<1x32xf32, #tpu.memory_space<vmem>>, vector<1x32xf32>
    %c0_14 = arith.constant 0 : index
    %c0_15 = arith.constant 0 : index
    %18 = vector.load %arg7[%c0_14, %c0_15] : memref<1x1xf32, #tpu.memory_space<vmem>>, vector<1x1xf32>
    %19 = vector.broadcast %17 : vector<1x32xf32> to vector<128x32xf32>
    %20 = arith.mulf %16, %19 : vector<128x32xf32>
    %cst_16 = arith.constant dense<0.000000e+00> : vector<128xf32>
    %21 = vector.multi_reduction <add>, %20, %cst_16 [1] : vector<128x32xf32> to vector<128xf32>
    %22 = vector.shape_cast %21 : vector<128xf32> to vector<128x1xf32>
    %23 = vector.broadcast %18 : vector<1x1xf32> to vector<128x1xf32>
    %24 = arith.addf %22, %23 : vector<128x1xf32>
    %25 = math.tanh %24 : vector<128x1xf32>
    %26 = vector.shape_cast %25 : vector<128x1xf32> to vector<1x128xf32>
    %c0_17 = arith.constant 0 : index
    %c0_18 = arith.constant 0 : index
    %27 = vector.load %arg8[%c0_17, %c0_18] : memref<1x128xf32, #tpu.memory_space<vmem>>, vector<1x128xf32>
    tpu.vector_store %arg8[%c0_17, %c0_18], %26 {strides = array<i32>} : memref<1x128xf32, #tpu.memory_space<vmem>>, vector<1x128xf32>,
    return
  }
  func.func @transform_0(%arg0: i32) -> (i32, i32) {
    %c0_i32 = arith.constant 0 : i32
    %c0_i32_0 = arith.constant 0 : i32
    return %arg0, %c0_i32 : i32, i32
  }
  func.func @transform_1(%arg0: i32) -> (i32, i32) {
    %c0_i32 = arith.constant 0 : i32
    %c0_i32_0 = arith.constant 0 : i32
    %c0_i32_1 = arith.constant 0 : i32
    return %c0_i32, %c0_i32_0 : i32, i32
  }
  func.func @transform_2(%arg0: i32) -> (i32, i32) {
    %c0_i32 = arith.constant 0 : i32
    %c0_i32_0 = arith.constant 0 : i32
    %c0_i32_1 = arith.constant 0 : i32
    return %c0_i32, %c0_i32_0 : i32, i32
  }
  func.func @transform_3(%arg0: i32) -> (i32, i32) {
    %c0_i32 = arith.constant 0 : i32
    %c0_i32_0 = arith.constant 0 : i32
    %c0_i32_1 = arith.constant 0 : i32
    return %c0_i32, %c0_i32_0 : i32, i32
  }
  func.func @transform_4(%arg0: i32) -> (i32, i32) {
    %c0_i32 = arith.constant 0 : i32
    %c0_i32_0 = arith.constant 0 : i32
    %c0_i32_1 = arith.constant 0 : i32
    return %c0_i32, %c0_i32_0 : i32, i32
  }
  func.func @transform_5(%arg0: i32) -> (i32, i32) {
    %c0_i32 = arith.constant 0 : i32
    %c0_i32_0 = arith.constant 0 : i32
    %c0_i32_1 = arith.constant 0 : i32
    return %c0_i32, %c0_i32_0 : i32, i32
  }
  func.func @transform_6(%arg0: i32) -> (i32, i32) {
    %c0_i32 = arith.constant 0 : i32
    %c0_i32_0 = arith.constant 0 : i32
    %c0_i32_1 = arith.constant 0 : i32
    return %c0_i32, %c0_i32_0 : i32, i32
  }
  func.func @transform_7(%arg0: i32) -> (i32, i32) {
    %c0_i32 = arith.constant 0 : i32
    %c0_i32_0 = arith.constant 0 : i32
    return %c0_i32, %arg0 : i32, i32
  }
}

</mosaic_0001>

<bundles_post_ra>
// kernel: linear_net_forward.1
= control target key start
LH: loop header
LB: loop body
LE: loop exit
PB: predicated region body
PF: predicated region fallthrough
CT: control target
= control target key end

     0   :  { %vm76_vm0 = vcmask 261120   ;;  %vm567_vm1 = vcmask 130112   ;;  %vm574_vm2 = vcmask 195712   ;;  %vm581_vm3 = vcmask 261312   ;;  %s1034_s1 = inlined_call_operand.vmem [shape: bf16[32,32], index: 1, kind: input, shape index: {}]   ;;  %s1035_s0 = inlined_call_operand.vmem [shape: f32[128,32], index: 0, kind: input, shape index: {}]   ;;  %s1036_s3 = inlined_call_operand.vmem [shape: bf16[32,32], index: 3, kind: input, shape index: {}]   ;;  %s1037_s2 = inlined_call_operand.vmem [shape: f32[1,32], index: 2, kind: input, shape index: {}]   ;;  %s1038_s6 = inlined_call_operand.<no memory space> [shape: f32[1,1], index: 6, kind: input, shape index: {}]   ;;  %s1039_s4 = inlined_call_operand.vmem [shape: f32[1,32], index: 4, kind: input, shape index: {}]   ;;  %s1040_s5 = inlined_call_operand.vmem [shape: f32[1,32], index: 5, kind: input, shape index: {}]   ;;  %s1041_s7 = inlined_call_operand.vmem [shape: f32[1,128], index: 7, kind: output, shape index: {}]  }
   0x1   :  { %v760_v0 = vld [vmem:[%s1034_s1] sm:$0xff]   ;;  %v761_v1 = vld [vmem:[%s1034_s1 + $0x8] sm:$0xff]   ;;  %v31_v5 = vld [vmem:[%s1035_s0 + $0x10] sm:$0xff]  ;;  %vm588_vm4 = vcmask 326912   ;;  %vm595_vm5 = vcmask 392512   ;;  %vm602_vm6 = vcmask 458112  }
   0x2   :  { %717 = vmatprep.subr.bf16.mxu0 %v760_v0  ;;  %v29_v2 = vld [vmem:[%s1035_s0] sm:$0xff]  ;;  %v30_v3 = vld [vmem:[%s1035_s0 + $0x8] sm:$0xff]  ;;  %v32_v6 = vld [vmem:[%s1035_s0 + $0x18] sm:$0xff]  ;;  %vm609_vm7 = vcmask 523712   ;;  %vm616_vm8 = vcmask 589312   ;;  %vm623_vm9 = vcmask 654912  }
   0x3   :  { %718 = vmatpush3.bf16.msra.mxu0 %v760_v0  ;;  %v50_v4 = vpack.c.bf16 %v30_v3, %v29_v2  ;;  %v33_v7 = vld [vmem:[%s1035_s0 + $0x20] sm:$0xff]  ;;  %v34_v8 = vld [vmem:[%s1035_s0 + $0x28] sm:$0xff]  ;;  %v51_v9 = vpack.c.bf16 %v32_v6, %v31_v5  ;;  %v35_v11 = vld [vmem:[%s1035_s0 + $0x30] sm:$0xff]  ;;  %vm630_vm10 = vcmask 720512   ;;  %vm637_vm11 = vcmask 786112  }
   0x4   :  { %719 = vmatprep.subr.bf16.mxu0 %v761_v1  ;;  %v52_v10 = vpack.c.bf16 %v34_v8, %v33_v7  ;;  %v36_v12 = vld [vmem:[%s1035_s0 + $0x38] sm:$0xff]  ;;  %v37_v13 = vld [vmem:[%s1035_s0 + $0x40] sm:$0xff]  ;;  %v38_v14 = vld [vmem:[%s1035_s0 + $0x48] sm:$0xff]  ;;  %vm644_vm12 = vcmask 851712   ;;  %vm651_vm13 = vcmask 917312   ;;  %vm658_vm14 = vcmask 982912  }
   0x5   :  { %721 = vmatprep.mubr.msk.bf16.mxu0 %vm76_vm0, %v50_v4  ;;  %v53_v15 = vpack.c.bf16 %v36_v12, %v35_v11  ;;  %v54_v16 = vpack.c.bf16 %v38_v14, %v37_v13  ;;  %v39_v17 = vld [vmem:[%s1035_s0 + $0x50] sm:$0xff]  ;;  %v40_v18 = vld [vmem:[%s1035_s0 + $0x58] sm:$0xff]  ;;  %v41_v19 = vld [vmem:[%s1035_s0 + $0x60] sm:$0xff]  ;;  %vm665_vm15 = vcmask 1048512  }
   0x6   :  { %v42_v20 = vld [vmem:[%s1035_s0 + $0x68] sm:$0xff]  ;;  %v55_v21 = vpack.c.bf16 %v40_v18, %v39_v17  ;;  %v43_v23 = vld [vmem:[%s1035_s0 + $0x70] sm:$0xff]  ;;  %v44_v24 = vld [vmem:[%s1035_s0 + $0x78] sm:$0xff] }
   0x7   :  { %720 = vmatpush3.bf16.msra.mxu0 %v761_v1  ;;  %v56_v22 = vpack.c.bf16 %v42_v20, %v41_v19  ;;  %v57_v25 = vpack.c.bf16 %v44_v24, %v43_v23  ;;  %v762_v26 = vld [vmem:[%s1036_s3] sm:$0xff]   ;;  %v763_v27 = vld [vmem:[%s1036_s3 + $0x8] sm:$0xff]  }
   0x8   :  { %737 = vmatprep.subr.bf16.mxu1 %v762_v26  ;;  %v673_v28 = vld [vmem:[%s1037_s2] ss:$0 sm:$0xff] }
   0x9   :  { %738 = vmatpush3.bf16.msra.mxu1 %v762_v26 }
   0xa   :  { %722 = vmatmul.mubr.msk.bf16.vlgmr.msra.gmra.mrb[0].mxu0 %vm76_vm0, %v51_v9  ;;  %739 = vmatprep.subr.bf16.mxu1 %v763_v27 }
   0xb   :  { %725 = vmatprep.mubr.msk.bf16.mxu0 %vm76_vm0, %v52_v10 }
   0xd   :  { %740 = vmatpush3.bf16.msra.mxu1 %v763_v27 }
  0x12   :  { %726 = vmatmul.mubr.msk.bf16.gmra.mrb[4].mxu0 %vm76_vm0, %v53_v15 }
  0x13   :  { %729 = vmatprep.mubr.msk.bf16.mxu0 %vm76_vm0, %v54_v16 }
  0x1a   :  { %730 = vmatmul.mubr.msk.bf16.gmra.mrb[8].mxu0 %vm76_vm0, %v55_v21  ;;  %v12_v21 = vstv %s1038_s6 }
  0x1b   :  { %733 = vmatprep.mubr.msk.bf16.mxu0 %vm76_vm0, %v56_v22  ;;  %13 = vst [vmem:[#allocation2] sm:$0x1] %v12_v21  ;;  %v922_v22 = vld [vmem:[%s1039_s4] ss:$0 sm:$0xff] }
  0x22   :  { %734 = vmatmul.mubr.msk.bf16.gmra.mrb[12].mxu0 %vm76_vm0, %v57_v25 }
  0xdd   :  { %v723_v29 = vpop.f32.mrb[0].mxu0 }
  0xde   :  { %v144_v30 = vadd.f32 %v723_v29, %v673_v28  ;;  %v135_v31 = vpop.f32.mrb[1].mxu0 }
  0xdf   :  { %v136_v32 = vadd.f32 %v673_v28, %v135_v31  ;;  %v724_v33 = vpop.f32.mrb[2].mxu0 }
  0xe0   :  { %v147_v34 = vadd.f32 %v724_v33, %v673_v28  ;;  %v138_v35 = vpop.f32.mrb[3].mxu0  ;;  %v200_v37 = vmax.f32 %v144_v30, 0.0 }
  0xe1   :  { %v139_v36 = vadd.f32 %v673_v28, %v138_v35  ;;  %v198_v39 = vmax.f32 %v136_v32, 0.0 }
  0xe2   :  { %v201_v38 = vmax.f32 %v147_v34, 0.0 }
  0xe3   :  { %v199_v40 = vmax.f32 %v139_v36, 0.0 }
  0xe4   :  { %v220_v41 = vpack.c.bf16 %v201_v38, %v200_v37 }
  0xe5   :  { %v727_v42 = vpop.f32.mrb[4].mxu0  ;;  %v219_v43 = vpack.c.bf16 %v199_v40, %v198_v39 }
  0xe6   :  { %v160_v44 = vadd.f32 %v727_v42, %v673_v28  ;;  %v151_v45 = vpop.f32.mrb[5].mxu0 }
  0xe7   :  { %v152_v46 = vadd.f32 %v673_v28, %v151_v45  ;;  %v728_v47 = vpop.f32.mrb[6].mxu0  ;;  %741 = vmatprep.mubr.msk.bf16.mxu1 %vm76_vm0, %v219_v43 }
  0xe8   :  { %v204_v48 = vmax.f32 %v160_v44, 0.0  ;;  %v163_v49 = vadd.f32 %v728_v47, %v673_v28  ;;  %v154_v50 = vpop.f32.mrb[7].mxu0  ;;  %742 = vmatmul.mubr.msk.bf16.vlgmr.msra.gmra.mrb[0].mxu1 %vm76_vm0, %v220_v41 }
  0xe9   :  { %v202_v51 = vmax.f32 %v152_v46, 0.0  ;;  %v155_v52 = vadd.f32 %v673_v28, %v154_v50 }
  0xea   :  { %v205_v53 = vmax.f32 %v163_v49, 0.0 }
  0xeb   :  { %v203_v54 = vmax.f32 %v155_v52, 0.0 }
  0xec   :  { %v222_v55 = vpack.c.bf16 %v205_v53, %v204_v48 }
  0xed   :  { %v221_v56 = vpack.c.bf16 %v203_v54, %v202_v51  ;;  %v731_v57 = vpop.f32.mrb[8].mxu0 }
  0xee   :  { %v176_v58 = vadd.f32 %v731_v57, %v673_v28  ;;  %v167_v59 = vpop.f32.mrb[9].mxu0 }
  0xef   :  { %v168_v60 = vadd.f32 %v673_v28, %v167_v59  ;;  %v732_v61 = vpop.f32.mrb[10].mxu0  ;;  %745 = vmatprep.mubr.msk.bf16.mxu1 %vm76_vm0, %v221_v56 }
  0xf0   :  { %v208_v62 = vmax.f32 %v176_v58, 0.0  ;;  %v179_v63 = vadd.f32 %v732_v61, %v673_v28  ;;  %v170_v0 = vpop.f32.mrb[11].mxu0  ;;  %746 = vmatmul.mubr.msk.bf16.gmra.mrb[4].mxu1 %vm76_vm0, %v222_v55 }
  0xf1   :  { %v206_v1 = vmax.f32 %v168_v60, 0.0  ;;  %v171_v2 = vadd.f32 %v673_v28, %v170_v0 }
  0xf2   :  { %v209_v3 = vmax.f32 %v179_v63, 0.0 }
  0xf3   :  { %v207_v4 = vmax.f32 %v171_v2, 0.0 }
  0xf4   :  { %v224_v5 = vpack.c.bf16 %v209_v3, %v208_v62 }
  0xf5   :  { %v223_v6 = vpack.c.bf16 %v207_v4, %v206_v1  ;;  %v735_v7 = vpop.f32.mrb[12].mxu0 }
  0xf6   :  { %v192_v8 = vadd.f32 %v735_v7, %v673_v28  ;;  %v183_v9 = vpop.f32.mrb[13].mxu0 }
  0xf7   :  { %v184_v10 = vadd.f32 %v673_v28, %v183_v9  ;;  %v736_v11 = vpop.f32.mrb[14].mxu0  ;;  %749 = vmatprep.mubr.msk.bf16.mxu1 %vm76_vm0, %v223_v6 }
  0xf8   :  { %v212_v12 = vmax.f32 %v192_v8, 0.0  ;;  %v195_v13 = vadd.f32 %v736_v11, %v673_v28  ;;  %v186_v14 = vpop.f32.mrb[15].mxu0  ;;  %750 = vmatmul.mubr.msk.bf16.gmra.mrb[8].mxu1 %vm76_vm0, %v224_v5 }
  0xf9   :  { %v210_v15 = vmax.f32 %v184_v10, 0.0  ;;  %v187_v16 = vadd.f32 %v673_v28, %v186_v14  ;;  %v929_v28 = vld [vmem:[%s1040_s5] ss:$0 sm:$0xff] }
  0xfa   :  { %v213_v17 = vmax.f32 %v195_v13, 0.0 }
  0xfb   :  { %v211_v18 = vmax.f32 %v187_v16, 0.0 }
  0xfc   :  { %v226_v19 = vpack.c.bf16 %v213_v17, %v212_v12 }
  0xfd   :  { %v225_v20 = vpack.c.bf16 %v211_v18, %v210_v15 }
  0xff   :  { %753 = vmatprep.mubr.msk.bf16.mxu1 %vm76_vm0, %v225_v20 }
 0x100   :  { %754 = vmatmul.mubr.msk.bf16.gmra.mrb[12].mxu1 %vm76_vm0, %v226_v19 }
 0x1bb   :  { %v743_v23 = vpop.f32.mrb[0].mxu1 }
 0x1bc   :  { %v312_v24 = vadd.f32 %v743_v23, %v922_v22  ;;  %v303_v25 = vpop.f32.mrb[1].mxu1 }
 0x1bd   :  { %v304_v26 = vadd.f32 %v922_v22, %v303_v25  ;;  %v744_v27 = vpop.f32.mrb[2].mxu1 }
 0x1be   :  { %v368_v29 = vmax.f32 %v312_v24, 0.0  ;;  %v315_v30 = vadd.f32 %v744_v27, %v922_v22  ;;  %v306_v31 = vpop.f32.mrb[3].mxu1 }
 0x1bf   :  { %v366_v32 = vmax.f32 %v304_v26, 0.0  ;;  %v307_v33 = vadd.f32 %v922_v22, %v306_v31 }
 0x1c0   :  { %v369_v34 = vmax.f32 %v315_v30, 0.0  ;;  %v392_v35 = vmul.f32 %v929_v28, %v368_v29 }
 0x1c1   :  { %v367_v36 = vmax.f32 %v307_v33, 0.0  ;;  %v390_v37 = vmul.f32 %v929_v28, %v366_v32 }
 0x1c2   :  { %v412_v38 = vsel %vm76_vm0, %v392_v35, 0.0  ;;  %v393_v39 = vmul.f32 %v929_v28, %v369_v34 }
 0x1c3   :  { %413 = vadd.xlane.f32.xlu1 %v412_v38  ;;  %v747_v40 = vpop.f32.mrb[4].mxu1  ;;  %v406_v41 = vsel %vm76_vm0, %v390_v37, 0.0  ;;  %v391_v42 = vmul.f32 %v929_v28, %v367_v36 }
 0x1c4   :  { %v328_v43 = vadd.f32 %v747_v40, %v922_v22  ;;  %v319_v44 = vpop.f32.mrb[5].mxu1  ;;  %407 = vadd.xlane.f32.xlu0 %v406_v41  ;;  %v415_v50 = vsel %vm76_vm0, %v393_v39, 0.0 }
 0x1c5   :  { %v320_v45 = vadd.f32 %v922_v22, %v319_v44  ;;  %v748_v46 = vpop.f32.mrb[6].mxu1  ;;  %v409_v53 = vsel %vm76_vm0, %v391_v42, 0.0  ;;  %v977_v42 = vld [vmem:[#allocation2] ss:$0 sm:$0xff] }
 0x1c6   :  { %v372_v47 = vmax.f32 %v328_v43, 0.0  ;;  %v331_v48 = vadd.f32 %v748_v46, %v922_v22  ;;  %v322_v49 = vpop.f32.mrb[7].mxu1 }
 0x1c7   :  { %v370_v51 = vmax.f32 %v320_v45, 0.0  ;;  %v323_v52 = vadd.f32 %v922_v22, %v322_v49  ;;  %416 = vadd.xlane.f32.xlu1 %v415_v50 }
 0x1c8   :  { %v373_v54 = vmax.f32 %v331_v48, 0.0  ;;  %410 = vadd.xlane.f32.xlu0 %v409_v53  ;;  %v396_v55 = vmul.f32 %v929_v28, %v372_v47 }
 0x1c9   :  { %v371_v56 = vmax.f32 %v323_v52, 0.0  ;;  %v394_v60 = vmul.f32 %v929_v28, %v370_v51 }
 0x1ca   :  { %v424_v57 = vsel %vm76_vm0, %v396_v55, 0.0  ;;  %v397_v58 = vmul.f32 %v929_v28, %v373_v54 }
 0x1cb   :  { %v751_v59 = vpop.f32.mrb[8].mxu1  ;;  %v395_v0 = vmul.f32 %v929_v28, %v371_v56  ;;  %v418_v7 = vsel %vm76_vm0, %v394_v60, 0.0 }
 0x1cc   :  { %v344_v61 = vadd.f32 %v751_v59, %v922_v22  ;;  %v335_v62 = vpop.f32.mrb[9].mxu1  ;;  %425 = vadd.xlane.f32.xlu0 %v424_v57  ;;  %v427_v63 = vsel %vm76_vm0, %v397_v58, 0.0 }
 0x1cd   :  { %v336_v1 = vadd.f32 %v922_v22, %v335_v62  ;;  %428 = vadd.xlane.f32.xlu1 %v427_v63  ;;  %v752_v2 = vpop.f32.mrb[10].mxu1  ;;  %v421_v10 = vsel %vm76_vm0, %v395_v0, 0.0 }
 0x1ce   :  { %v376_v3 = vmax.f32 %v344_v61, 0.0  ;;  %v347_v4 = vadd.f32 %v752_v2, %v922_v22  ;;  %v338_v5 = vpop.f32.mrb[11].mxu1 }
 0x1cf   :  { %v374_v6 = vmax.f32 %v336_v1, 0.0  ;;  %v339_v8 = vadd.f32 %v922_v22, %v338_v5 }
 0x1d0   :  { %v377_v9 = vmax.f32 %v347_v4, 0.0  ;;  %419 = vadd.xlane.f32.xlu0 %v418_v7  ;;  %v400_v11 = vmul.f32 %v929_v28, %v376_v3 }
 0x1d1   :  { %v375_v12 = vmax.f32 %v339_v8, 0.0  ;;  %422 = vadd.xlane.f32.xlu1 %v421_v10  ;;  %v398_v13 = vmul.f32 %v929_v28, %v374_v6 }
 0x1d2   :  { %v401_v14 = vmul.f32 %v929_v28, %v377_v9  ;;  %v436_v15 = vsel %vm76_vm0, %v400_v11, 0.0 }
 0x1d3   :  { %v755_v16 = vpop.f32.mrb[12].mxu1  ;;  %v399_v17 = vmul.f32 %v929_v28, %v375_v12  ;;  %v430_v24 = vsel %vm76_vm0, %v398_v13, 0.0 }
 0x1d4   :  { %v360_v18 = vadd.f32 %v755_v16, %v922_v22  ;;  %v351_v19 = vpop.f32.mrb[13].mxu1  ;;  %v439_v20 = vsel %vm76_vm0, %v401_v14, 0.0  ;;  %437 = vadd.xlane.f32.xlu0 %v436_v15 }
 0x1d5   :  { %v352_v21 = vadd.f32 %v922_v22, %v351_v19  ;;  %v756_v23 = vpop.f32.mrb[14].mxu1  ;;  %440 = vadd.xlane.f32.xlu1 %v439_v20  ;;  %v433_v29 = vsel %vm76_vm0, %v399_v17, 0.0 }
 0x1d6   :  { %v380_v25 = vmax.f32 %v360_v18, 0.0  ;;  %v363_v26 = vadd.f32 %v756_v23, %v922_v22  ;;  %v354_v27 = vpop.f32.mrb[15].mxu1 }
 0x1d7   :  { %v378_v30 = vmax.f32 %v352_v21, 0.0  ;;  %v355_v31 = vadd.f32 %v922_v22, %v354_v27  ;;  %v796_v22 = vmov 0  }
 0x1d8   :  { %v381_v32 = vmax.f32 %v363_v26, 0.0  ;;  %431 = vadd.xlane.f32.xlu0 %v430_v24  ;;  %v404_v35 = vmul.f32 %v929_v28, %v380_v25  ;;  %758 = vset.pattern.permute.xlu1 %v796_v22 }
 0x1d9   :  { %v379_v33 = vmax.f32 %v355_v31, 0.0  ;;  %434 = vadd.xlane.f32.xlu1 %v433_v29  ;;  %v402_v34 = vmul.f32 %v929_v28, %v378_v30  ;;  %759 = vset.pattern.permute.xlu0 %v796_v22  ;;  %v556_v29 = vlaneseq }
 0x1da   :  { %v405_v38 = vmul.f32 %v929_v28, %v381_v32  ;;  %v448_v40 = vsel %vm76_vm0, %v404_v35, 0.0 }
 0x1db   :  { %v442_v36 = vsel %vm76_vm0, %v402_v34, 0.0  ;;  %v403_v37 = vmul.f32 %v929_v28, %v379_v33  ;;  %v995_v31 = vand.u32 127, %v556_v29  ;;  %v998_v34 = vshrl.u32 %v556_v29, 7 }
 0x1dc   :  { %443 = vadd.xlane.f32.xlu0 %v442_v36  ;;  %v451_v41 = vsel %vm76_vm0, %v405_v38, 0.0 }
 0x1dd   :  { %v445_v39 = vsel %vm76_vm0, %v403_v37, 0.0  ;;  %v562_v32 = vadd.s32 4294967288, %v995_v31  ;;  %v569_v37 = vadd.s32 4294967280, %v995_v31  ;;  %v560_v38 = vsub.s32 %v995_v31, %v998_v34 }
 0x1de   :  { %446 = vadd.xlane.f32.xlu1 %v445_v39  ;;  %v576_v22 = vadd.s32 4294967272, %v995_v31 }
 0x1df   :  { %v565_v35 = vsub.s32 %v562_v32, %v998_v34 }
 0x1e0   :  { %449 = vadd.xlane.f32.xlu0 %v448_v40  ;;  %v583_v40 = vadd.s32 4294967264, %v995_v31 }
 0x1e2   :  { %452 = vadd.xlane.f32.xlu1 %v451_v41 }
 0x250   :  { %v414_v43 = vpop.xlane.xlu1 %413 }
 0x251   :  { %v462_v44 = vadd.f32 %v977_v42, %v414_v43  ;;  %v408_v45 = vpop.xlane.xlu0 %407  ;;  %v572_v43 = vsub.s32 %v569_v37, %v998_v34 }
 0x252   :  { %v460_v28 = vadd.f32 %v977_v42, %v408_v45 }
 0x253   :  { %764 = vtanh.f32 %v462_v44  ;;  %v590_v44 = vadd.s32 4294967256, %v995_v31 }
 0x254   :  { %766 = vtanh.f32 %v460_v28  ;;  %v417_v46 = vpop.xlane.xlu1 %416  ;;  %v586_v28 = vsub.s32 %v583_v40, %v998_v34 }
 0x255   :  { %v463_v47 = vadd.f32 %v977_v42, %v417_v46  ;;  %v411_v48 = vpop.xlane.xlu0 %410  ;;  %v579_v46 = vsub.s32 %v576_v22, %v998_v34 }
 0x256   :  { %v461_v49 = vadd.f32 %v977_v42, %v411_v48 }
 0x257   :  { %768 = vtanh.f32 %v463_v47 }
 0x258   :  { %770 = vtanh.f32 %v461_v49 }
 0x259   :  { %v426_v50 = vpop.xlane.xlu0 %425 }
 0x25a   :  { %v429_v51 = vpop.xlane.xlu1 %428  ;;  %v466_v52 = vadd.f32 %v977_v42, %v426_v50  ;;  %v597_v50 = vadd.s32 4294967248, %v995_v31 }
 0x25b   :  { %v467_v61 = vadd.f32 %v977_v42, %v429_v51 }
 0x25c   :  { %772 = vtanh.f32 %v466_v52  ;;  %v593_v52 = vsub.s32 %v590_v44, %v998_v34 }
 0x25d   :  { %v765_v53 = vpop.eup %764  ;;  %v420_v54 = vpop.xlane.xlu0 %419 }
 0x25e   :  { %v767_v55 = vpop.eup %766  ;;  %515 = vperm.xlu1 %758, %v765_v53   ;;  %v423_v56 = vpop.xlane.xlu1 %422  ;;  %v464_v57 = vadd.f32 %v977_v42, %v420_v54 }
 0x25f   :  { %509 = vperm.xlu0 %759, %v767_v55   ;;  %v465_v1 = vadd.f32 %v977_v42, %v423_v56  ;;  %v604_v56 = vadd.s32 4294967240, %v995_v31 }
 0x260   :  { %774 = vtanh.f32 %v464_v57 }
 0x261   :  { %v769_v58 = vpop.eup %768  ;;  %v438_v60 = vpop.xlane.xlu0 %437 }
 0x262   :  { %518 = vperm.xlu1 %758, %v769_v58   ;;  %v441_v59 = vpop.xlane.xlu1 %440  ;;  %v771_v63 = vpop.eup %770  ;;  %v470_v5 = vadd.f32 %v977_v42, %v438_v60  ;;  %v600_v58 = vsub.s32 %v597_v50, %v998_v34  ;;  %v611_v60 = vadd.s32 4294967232, %v995_v31 }
 0x263   :  { %v471_v62 = vadd.f32 %v977_v42, %v441_v59 }
 0x265   :  { %776 = vtanh.f32 %v471_v62  ;;  %v432_v3 = vpop.xlane.xlu0 %431  ;;  %v618_v62 = vadd.s32 4294967224, %v995_v31 }
 0x266   :  { %v435_v0 = vpop.xlane.xlu1 %434  ;;  %512 = vperm.xlu1 %758, %v771_v63   ;;  %778 = vtanh.f32 %v467_v61  ;;  %v773_v4 = vpop.eup %772  ;;  %v468_v11 = vadd.f32 %v977_v42, %v432_v3  ;;  %v607_v3 = vsub.s32 %v604_v56, %v998_v34 }
 0x267   :  { %v469_v2 = vadd.f32 %v977_v42, %v435_v0 }
 0x269   :  { %780 = vtanh.f32 %v469_v2  ;;  %v444_v9 = vpop.xlane.xlu0 %443  ;;  %v632_v2 = vadd.s32 4294967208, %v995_v31 }
 0x26a   :  { %527 = vperm.xlu1 %758, %v773_v4   ;;  %782 = vtanh.f32 %v465_v1  ;;  %v775_v8 = vpop.eup %774  ;;  %v472_v16 = vadd.f32 %v977_v42, %v444_v9  ;;  %v625_v1 = vadd.s32 4294967216, %v995_v31  ;;  %v621_v9 = vsub.s32 %v618_v62, %v998_v34 }
 0x26b   :  { %v447_v6 = vpop.xlane.xlu1 %446 }
 0x26c   :  { %v473_v7 = vadd.f32 %v977_v42, %v447_v6 }
 0x26d   :  { %v450_v17 = vpop.xlane.xlu0 %449 }
 0x26e   :  { %784 = vtanh.f32 %v473_v7  ;;  %521 = vperm.xlu1 %758, %v775_v8   ;;  %v474_v19 = vadd.f32 %v977_v42, %v450_v17  ;;  %v614_v7 = vsub.s32 %v611_v60, %v998_v34  ;;  %v639_v8 = vadd.s32 4294967200, %v995_v31 }
 0x26f   :  { %v777_v10 = vpop.eup %776  ;;  %786 = vtanh.f32 %v470_v5  ;;  %v453_v12 = vpop.xlane.xlu1 %452 }
 0x270   :  { %v475_v13 = vadd.f32 %v977_v42, %v453_v12  ;;  %542 = vperm.xlu0 %759, %v777_v10   ;;  %v779_v14 = vpop.eup %778  ;;  %v635_v12 = vsub.s32 %v632_v2, %v998_v34 }
 0x272   :  { %788 = vtanh.f32 %v475_v13  ;;  %530 = vperm.xlu1 %758, %v779_v14   ;;  %v646_v14 = vadd.s32 4294967192, %v995_v31 }
 0x273   :  { %v781_v15 = vpop.eup %780  ;;  %790 = vtanh.f32 %v468_v11  ;;  %v628_v11 = vsub.s32 %v625_v1, %v998_v34 }
 0x274   :  { %536 = vperm.xlu0 %759, %v781_v15   ;;  %v783_v18 = vpop.eup %782  ;;  %792 = vtanh.f32 %v472_v16 }
 0x275   :  { %794 = vtanh.f32 %v474_v19  ;;  %v653_v19 = vadd.s32 4294967184, %v995_v31 }
 0x276   :  { %524 = vperm.xlu1 %758, %v783_v18   ;;  %v642_v18 = vsub.s32 %v639_v8, %v998_v34 }
 0x278   :  { %v785_v20 = vpop.eup %784 }
 0x279   :  { %v787_v21 = vpop.eup %786  ;;  %548 = vperm.xlu0 %759, %v785_v20  }
 0x27a   :  { %539 = vperm.xlu1 %758, %v787_v21   ;;  %v660_v21 = vadd.s32 4294967176, %v995_v31 }
 0x27c   :  { %v789_v23 = vpop.eup %788 }
 0x27d   :  { %v791_v24 = vpop.eup %790  ;;  %554 = vperm.xlu0 %759, %v789_v23  }
 0x27e   :  { %533 = vperm.xlu1 %758, %v791_v24   ;;  %v793_v25 = vpop.eup %792 }
 0x27f   :  { %v795_v26 = vpop.eup %794 }
 0x282   :  { %545 = vperm.xlu1 %758, %v793_v25  }
 0x286   :  { %551 = vperm.xlu1 %758, %v795_v26  }
 0x2dd   :  { %v516_v27 = vpop.permute.xlu1 %515 }
 0x2de   :  { %v510_v39 = vpop.permute.xlu0 %509  ;;  %v573_v49 = vrot.slane %v516_v27, %v572_v43  ;;  %v649_v27 = vsub.s32 %v646_v14, %v998_v34 }
 0x2df   :  { %v561_v45 = vrot.slane %v510_v39, %v560_v38 }
 0x2e1   :  { %v519_v30 = vpop.permute.xlu1 %518 }
 0x2e2   :  { %v580_v55 = vrot.slane %v519_v30, %v579_v46 }
 0x2e5   :  { %v513_v33 = vpop.permute.xlu1 %512 }
 0x2e6   :  { %v566_v41 = vrot.slane %v513_v33, %v565_v35  ;;  %v656_v35 = vsub.s32 %v653_v19, %v998_v34 }
 0x2e8   :  { %v568_v47 = vsel %vm567_vm1, %v566_v41, %v561_v45 }
 0x2e9   :  { %v528_v36 = vpop.permute.xlu1 %527  ;;  %v575_v53 = vsel %vm574_vm2, %v573_v49, %v568_v47 }
 0x2ea   :  { %v582_v61 = vsel %vm581_vm3, %v580_v55, %v575_v53  ;;  %v601_v6 = vrot.slane %v528_v36, %v600_v58  ;;  %v663_v36 = vsub.s32 %v660_v21, %v998_v34 }
 0x2ed   :  { %v522_v42 = vpop.permute.xlu1 %521 }
 0x2ee   :  { %v587_v54 = vrot.slane %v522_v42, %v586_v28 }
 0x2ef   :  { %v543_v51 = vpop.permute.xlu0 %542 }
 0x2f0   :  { %v589_v63 = vsel %vm588_vm4, %v587_v54, %v582_v61  ;;  %v636_v26 = vrot.slane %v543_v51, %v635_v12 }
 0x2f1   :  { %v531_v48 = vpop.permute.xlu1 %530 }
 0x2f2   :  { %v608_v13 = vrot.slane %v531_v48, %v607_v3 }
 0x2f3   :  { %v537_v0 = vpop.permute.xlu0 %536 }
 0x2f4   :  { %v622_v20 = vrot.slane %v537_v0, %v621_v9 }
 0x2f5   :  { %v525_v57 = vpop.permute.xlu1 %524 }
 0x2f6   :  { %v594_v59 = vrot.slane %v525_v57, %v593_v52 }
 0x2f8   :  { %v596_v4 = vsel %vm595_vm5, %v594_v59, %v589_v63  ;;  %v549_v16 = vpop.permute.xlu0 %548 }
 0x2f9   :  { %v540_v5 = vpop.permute.xlu1 %539  ;;  %v603_v10 = vsel %vm602_vm6, %v601_v6, %v596_v4  ;;  %v650_v39 = vrot.slane %v549_v16, %v649_v27 }
 0x2fa   :  { %v610_v23 = vsel %vm609_vm7, %v608_v13, %v603_v10  ;;  %v629_v24 = vrot.slane %v540_v5, %v628_v11 }
 0x2fc   :  { %v555_v38 = vpop.permute.xlu0 %554 }
 0x2fd   :  { %v534_v15 = vpop.permute.xlu1 %533  ;;  %v664_v41 = vrot.slane %v555_v38, %v663_v36 }
 0x2fe   :  { %v615_v17 = vrot.slane %v534_v15, %v614_v7 }
 0x300   :  { %v617_v25 = vsel %vm616_vm8, %v615_v17, %v610_v23 }
 0x301   :  { %v624_v29 = vsel %vm623_vm9, %v622_v20, %v617_v25  ;;  %v546_v30 = vpop.permute.xlu1 %545 }
 0x302   :  { %v631_v32 = vsel %vm630_vm10, %v629_v24, %v624_v29  ;;  %v643_v33 = vrot.slane %v546_v30, %v642_v18 }
 0x303   :  { %v638_v37 = vsel %vm637_vm11, %v636_v26, %v631_v32 }
 0x304   :  { %v645_v31 = vsel %vm644_vm12, %v643_v33, %v638_v37 }
 0x305   :  { %v552_v40 = vpop.permute.xlu1 %551  ;;  %v652_v42 = vsel %vm651_vm13, %v650_v39, %v645_v31 }
 0x306   :  { %v657_v22 = vrot.slane %v552_v40, %v656_v35 }
 0x308   :  { %v659_v43 = vsel %vm658_vm14, %v657_v22, %v652_v42 }
 0x309   :  { %v666_v44 = vsel %vm665_vm15, %v664_v41, %v659_v43 }
 0x30a   :  { %668 = vst [vmem:[%s1041_s7] sm:$0x1] %v666_v44 }

</bundles_post_ra>
